<compile_context>
chip_gen: v5e
topology: v5e:2x2
jax: 0.10.0
libtpu: 0.0.40
codegen_flags: <defaults>
</compile_context>

<pallas_src>
import functools

import jax
import jax.numpy as jnp
from jax import lax
from jax.experimental import pallas as pl
from jax.experimental.pallas import tpu as pltpu


def _round_up(v, m):
    return (v + m - 1) // m * m


def _pad2(m, rows, cols, dtype):
    return jnp.pad(m, ((0, rows - m.shape[0]), (0, cols - m.shape[1]))).astype(dtype)


def gcn_mid_kernel(a_ref, g_ref, w_next_ref, b_ref, g_out_ref):
    """One row block of  G_{l+1} = relu(A_hat @ G_l + b_l) @ W_{l+1}  (all lane-dense)."""
    pre = jnp.dot(a_ref[...], g_ref[...], preferred_element_type=jnp.float32) + b_ref[...]
    h = jnp.maximum(pre, 0.0).astype(jnp.bfloat16)            # dropout(training=False) == id
    g_out_ref[...] = jnp.dot(
        h, w_next_ref[...], preferred_element_type=jnp.float32
    ).astype(jnp.bfloat16)


def gcn_final_kernel(a_ref, g_ref, b_ref, o_ref, *, out_dim):
    """One row block of  log_softmax(A_hat @ G_2 + b_3)  with padded lanes masked out."""
    pre = jnp.dot(a_ref[...], g_ref[...], preferred_element_type=jnp.float32) + b_ref[...]
    lane = lax.broadcasted_iota(jnp.int32, pre.shape, dimension=1)
    z = jnp.where(lane < out_dim, pre, jnp.float32(-1e30))    # mask padded lanes
    m = jnp.max(z, axis=1, keepdims=True)
    s = z - m
    lse = jnp.log(jnp.sum(jnp.exp(s), axis=1, keepdims=True))
    o_ref[...] = s - lse


def gcn_forward(a_norm, x, w1, b1, w2, b2, w3, b3, *, block_rows=512):
    """Fused 3-layer GCN forward.  a_norm: (N, N) normalized adjacency, x: (N, F_in)."""
    n, _ = x.shape
    hid = w1.shape[1]
    out_dim = w3.shape[1]

    lanes = 128
    dp = lanes                      # padded feature width for hidden / output (<= 128 here)
    assert hid <= dp and out_dim <= dp

    # MXU-aligned row tile: multiple of 128, capped so the two double-buffered (tm, n_pad)
    # bf16 A_hat tiles stay under ~32 MiB (safe even within v7x's 64 MiB VMEM).
    n_up = _round_up(n, lanes)
    tm = max(lanes, min(_round_up(block_rows, lanes), n_up))
    a_budget = 32 * 2 ** 20
    tm_cap = max(lanes, (a_budget // (2 * n_up * 2)) // lanes * lanes)
    tm = min(tm, tm_cap)
    n_pad = _round_up(n, tm)
    nb = n_pad // tm

    # ---- lane-dense bf16 operand packing (zero padding keeps the math exact) ----
    a_p = _pad2(a_norm, n_pad, n_pad, jnp.bfloat16)
    w2_p = _pad2(w2, dp, dp, jnp.bfloat16)
    w3_p = _pad2(w3, dp, dp, jnp.bfloat16)
    b1_p = jnp.zeros((1, dp), jnp.float32).at[0, :hid].set(b1)
    b2_p = jnp.zeros((1, dp), jnp.float32).at[0, :hid].set(b2)
    b3_p = jnp.zeros((1, dp), jnp.float32).at[0, :out_dim].set(b3)

    # Hoisted layer-0 feature transform: G_0 = X @ W1 (bf16 operands, f32 accumulation).
    g0 = jnp.dot(
        x.astype(jnp.bfloat16), w1.astype(jnp.bfloat16), preferred_element_type=jnp.float32
    ).astype(jnp.bfloat16)
    g = _pad2(g0, n_pad, dp, jnp.bfloat16)

    # Explicit VMEM budget: double-buffered A tiles + resident G / W / bias + output blocks,
    # with 2x headroom, capped at 48 MiB (safe on v5e/v6e/v7x scoped VMEM).
    est = (2 * tm * n_pad * 2 + 2 * n_pad * dp * 2 + 2 * dp * dp * 2
           + 2 * dp * 4 + 2 * tm * dp * 4)
    vmem_limit = int(min(48 * 2 ** 20, max(16 * 2 ** 20, 2 * est)))
    cparams = pltpu.CompilerParams(
        dimension_semantics=("parallel",),          # independent row blocks -> megacore OK
        vmem_limit_bytes=vmem_limit,
    )

    a_spec = pl.BlockSpec((tm, n_pad), lambda i: (i, 0))   # streamed A_hat row tiles
    g_spec = pl.BlockSpec((n_pad, dp), lambda i: (0, 0))   # resident G_l (bf16, lane dense)
    w_spec = pl.BlockSpec((dp, dp), lambda i: (0, 0))      # resident W_{l+1}
    b_spec = pl.BlockSpec((1, dp), lambda i: (0, 0))       # per-layer bias row

    mid = pl.pallas_call(
        gcn_mid_kernel,
        out_shape=jax.ShapeDtypeStruct((n_pad, dp), jnp.bfloat16),
        grid=(nb,),
        in_specs=[a_spec, g_spec, w_spec, b_spec],
        out_specs=pl.BlockSpec((tm, dp), lambda i: (i, 0)),
        compiler_params=cparams,
    )
    final = pl.pallas_call(
        functools.partial(gcn_final_kernel, out_dim=out_dim),
        out_shape=jax.ShapeDtypeStruct((n_pad, dp), jnp.float32),
        grid=(nb,),
        in_specs=[a_spec, g_spec, b_spec],
        out_specs=pl.BlockSpec((tm, dp), lambda i: (i, 0)),
        compiler_params=cparams,
    )

    g = mid(a_p, g, w2_p, b1_p)        # G_1 = relu(A_hat @ G_0 + b1) @ W2
    g = mid(a_p, g, w3_p, b2_p)        # G_2 = relu(A_hat @ G_1 + b2) @ W3
    out_padded = final(a_p, g, b3_p)   # log_softmax(A_hat @ G_2 + b3)

    return out_padded[:n, :out_dim]


def gcn_reference(a_norm, x, w1, b1, w2, b2, w3, b3):
    """Pure-JAX f32 reference of the same forward pass."""
    h = jnp.maximum(a_norm @ (x @ w1) + b1, 0.0)
    h = jnp.maximum(a_norm @ (h @ w2) + b2, 0.0)
    h = a_norm @ (h @ w3) + b3
    return jax.nn.log_softmax(h, axis=1)


def glorot(key, shape):
    fan_in, fan_out = shape
    limit = jnp.sqrt(6.0 / (fan_in + fan_out))
    return jax.random.uniform(key, shape, jnp.float32, -limit, limit)


def build_normalized_adjacency(x):
    """Mimics the data prep: graph over samples from a Pearson-correlation matrix,
    then standard GCN symmetric normalization with self loops."""
    xc = x - x.mean(axis=1, keepdims=True)
    denom = jnp.sqrt((xc * xc).sum(axis=1, keepdims=True))
    xn = xc / jnp.maximum(denom, 1e-12)
    corr = xn @ xn.T                                   # (N, N) Pearson correlation
    adj = (jnp.abs(corr) > 0.1).astype(jnp.float32)    # edges where |corr| is non-negligible
    adj = jnp.maximum(adj, adj.T)                      # symmetric
    n = adj.shape[0]
    adj_hat = adj * (1.0 - jnp.eye(n)) + jnp.eye(n)    # A + I (self loops exactly once)
    deg = adj_hat.sum(axis=1)
    d_inv_sqrt = 1.0 / jnp.sqrt(jnp.maximum(deg, 1e-12))
    return adj_hat * d_inv_sqrt[:, None] * d_inv_sqrt[None, :]


if __name__ == "__main__":
    # Module-consistent dims: input_dim=1022, hidden_dim=10, output_dim=2; small node count.
    N, INPUT_DIM, HIDDEN_DIM, OUTPUT_DIM = 256, 1022, 10, 2

    key = jax.random.PRNGKey(0)
    kx, k1, k2, k3, kb1, kb2, kb3 = jax.random.split(key, 7)

    x = jax.random.normal(kx, (N, INPUT_DIM), jnp.float32)
    a_norm = build_normalized_adjacency(x)

    # Glorot weights (PyG GCNConv default); small random biases to exercise the bias path.
    w1 = glorot(k1, (INPUT_DIM, HIDDEN_DIM))
    b1 = 0.1 * jax.random.normal(kb1, (HIDDEN_DIM,), jnp.float32)
    w2 = glorot(k2, (HIDDEN_DIM, HIDDEN_DIM))
    b2 = 0.1 * jax.random.normal(kb2, (HIDDEN_DIM,), jnp.float32)
    w3 = glorot(k3, (HIDDEN_DIM, OUTPUT_DIM))
    b3 = 0.1 * jax.random.normal(kb3, (OUTPUT_DIM,), jnp.float32)

    # block_rows=128 -> per-layer grid of 2 independent ("parallel") MXU-aligned row blocks.
    out = gcn_forward(a_norm, x, w1, b1, w2, b2, w3, b3, block_rows=128)
    out = jax.block_until_ready(out)

    ref = gcn_reference(a_norm, x, w1, b1, w2, b2, w3, b3)

    # sanity: shape, finiteness, log_softmax normalization, closeness to the f32 reference
    # (bf16 matmul operands -> small numerical differences).
    assert out.shape == (N, OUTPUT_DIM)
    assert bool(jnp.all(jnp.isfinite(out)))
    assert bool(jnp.allclose(jnp.sum(jnp.exp(out), axis=1), 1.0, atol=1e-4))
    max_err = float(jnp.max(jnp.abs(out - ref)))
    assert bool(jnp.allclose(out, ref, atol=1e-1, rtol=5e-2)), max_err

    print("KERNEL_OK")
</pallas_src>

<mosaic_0001>
module attributes {stable_mosaic.version = 11 : i64} {
  func.func @gcn_mid_kernel(%arg0: i32, %arg1: memref<128x256xbf16, #tpu.memory_space<vmem>>, %arg2: memref<256x128xbf16, #tpu.memory_space<vmem>>, %arg3: memref<128x128xbf16, #tpu.memory_space<vmem>>, %arg4: memref<1x128xf32, #tpu.memory_space<vmem>>, %arg5: memref<128x128xbf16, #tpu.memory_space<vmem>>) attributes {dimension_semantics = [#tpu.dimension_semantics<parallel>], iteration_bounds = array<i64: 2>, scalar_prefetch = 0 : i64, scratch_operands = 0 : i64, tpu.core_type = #tpu.core_type<tc>, window_params = [{transform_indices = @transform_0, window_bounds = array<i64: 128, 256>}, {pipeline_mode = #tpu.pipeline_mode<synchronous>, transform_indices = @transform_1, window_bounds = array<i64: 256, 128>}, {pipeline_mode = #tpu.pipeline_mode<synchronous>, transform_indices = @transform_2, window_bounds = array<i64: 128, 128>}, {pipeline_mode = #tpu.pipeline_mode<synchronous>, transform_indices = @transform_3, window_bounds = array<i64: 1, 128>}, {transform_indices = @transform_4, window_bounds = array<i64: 128, 128>}]} {
    %c0 = arith.constant 0 : index
    %c0_0 = arith.constant 0 : index
    %0 = vector.load %arg1[%c0, %c0_0] : memref<128x256xbf16, #tpu.memory_space<vmem>>, vector<128x256xbf16>
    %c0_1 = arith.constant 0 : index
    %c0_2 = arith.constant 0 : index
    %1 = vector.load %arg2[%c0_1, %c0_2] : memref<256x128xbf16, #tpu.memory_space<vmem>>, vector<256x128xbf16>
    %cst = arith.constant dense<0.000000e+00> : vector<128x128xf32>
    %2 = tpu.matmul %0, %1, %cst {dimension_numbers = #tpu.dot_dimension_numbers<[1], [0], [0], [1], [0, 0, 1, 1], [], []>} : vector<128x256xbf16>, vector<256x128xbf16>, vector<128x128xf32> -> vector<128x128xf32>
    %c0_3 = arith.constant 0 : index
    %c0_4 = arith.constant 0 : index
    %3 = vector.load %arg4[%c0_3, %c0_4] : memref<1x128xf32, #tpu.memory_space<vmem>>, vector<1x128xf32>
    %4 = vector.broadcast %3 : vector<1x128xf32> to vector<128x128xf32>
    %5 = arith.addf %2, %4 : vector<128x128xf32>
    %cst_5 = arith.constant 0.000000e+00 : f32
    %6 = vector.broadcast %cst_5 : f32 to vector<128x128xf32>
    %7 = arith.maximumf %5, %6 : vector<128x128xf32>
    %8 = arith.truncf %7 : vector<128x128xf32> to vector<128x128xbf16>
    %c0_6 = arith.constant 0 : index
    %c0_7 = arith.constant 0 : index
    %9 = vector.load %arg3[%c0_6, %c0_7] : memref<128x128xbf16, #tpu.memory_space<vmem>>, vector<128x128xbf16>
    %cst_8 = arith.constant dense<0.000000e+00> : vector<128x128xf32>
    %10 = tpu.matmul %8, %9, %cst_8 {dimension_numbers = #tpu.dot_dimension_numbers<[1], [0], [0], [1], [0, 0, 1, 1], [], []>} : vector<128x128xbf16>, vector<128x128xbf16>, vector<128x128xf32> -> vector<128x128xf32>
    %11 = arith.truncf %10 : vector<128x128xf32> to vector<128x128xbf16>
    %c0_9 = arith.constant 0 : index
    %c0_10 = arith.constant 0 : index
    %12 = vector.load %arg5[%c0_9, %c0_10] : memref<128x128xbf16, #tpu.memory_space<vmem>>, vector<128x128xbf16>
    tpu.vector_store %arg5[%c0_9, %c0_10], %11 {strides = array<i32>} : memref<128x128xbf16, #tpu.memory_space<vmem>>, vector<128x128xbf16>,
    return
  }
  func.func @transform_0(%arg0: i32) -> (i32, i32) {
    %c0_i32 = arith.constant 0 : i32
    %c0_i32_0 = arith.constant 0 : i32
    return %arg0, %c0_i32 : i32, i32
  }
  func.func @transform_1(%arg0: i32) -> (i32, i32) {
    %c0_i32 = arith.constant 0 : i32
    %c0_i32_0 = arith.constant 0 : i32
    %c0_i32_1 = arith.constant 0 : i32
    return %c0_i32, %c0_i32_0 : i32, i32
  }
  func.func @transform_2(%arg0: i32) -> (i32, i32) {
    %c0_i32 = arith.constant 0 : i32
    %c0_i32_0 = arith.constant 0 : i32
    %c0_i32_1 = arith.constant 0 : i32
    return %c0_i32, %c0_i32_0 : i32, i32
  }
  func.func @transform_3(%arg0: i32) -> (i32, i32) {
    %c0_i32 = arith.constant 0 : i32
    %c0_i32_0 = arith.constant 0 : i32
    %c0_i32_1 = arith.constant 0 : i32
    return %c0_i32, %c0_i32_0 : i32, i32
  }
  func.func @transform_4(%arg0: i32) -> (i32, i32) {
    %c0_i32 = arith.constant 0 : i32
    %c0_i32_0 = arith.constant 0 : i32
    return %arg0, %c0_i32 : i32, i32
  }
}

</mosaic_0001>

<bundles_post_ra>
// kernel: tpu_custom_call.1
= control target key start
LH: loop header
LB: loop body
LE: loop exit
PB: predicated region body
PF: predicated region fallthrough
CT: control target
= control target key end

     0   :  { %9 = vsyncpa [#allocation3], 0  ;;  %s1627_s0 = inlined_call_operand.hbm [shape: bf16[256,256], index: 0, kind: input, shape index: {}]   ;;  %s1628_s1 = inlined_call_operand.hbm [shape: bf16[256,128], index: 1, kind: input, shape index: {}]   ;;  %s1629_s2 = inlined_call_operand.hbm [shape: bf16[128,128], index: 2, kind: input, shape index: {}]   ;;  %s1630_s3 = inlined_call_operand.vmem [shape: f32[1,128], index: 3, kind: input, shape index: {}]   ;;  %s1631_s4 = inlined_call_operand.hbm [shape: bf16[256,128], index: 4, kind: output, shape index: {}]  }
   0x1   :  { %11 = vsyncpa [#allocation3 + $0x1], 0 }
   0x2   :  { %12 = vsyncpa [#allocation6], 0 }
   0x3   :  { %13 = vsyncpa [#allocation4], 0 }
   0x4   :  { %15 = vsyncpa [#allocation4 + $0x1], 0  ;;  %s1419_s15 = smov 0   ;;  %s1421_s16 = smov 0  }
   0x5   :  { %s1423_s17 = smov 0   ;;  %s1425_s18 = smov 0  }
   0x6 LB: > { %s1440_s19 = sadd.s32 4294967295, %s1384_s18   ;;  %s857_s20 = sadd.s32 4294967294, %s1384_s18   ;;  %s1384_s18 = sphi %s1425_s18, %s1641_s18   ;;  %s1380_s17 = sphi %s1423_s17, %s1640_s17   ;;  %s1376_s16 = sphi %s1421_s16, %s1639_s16   ;;  %s1372_s15 = sphi %s1419_s15, %s1638_s15  }
   0x7   : > { %p41_p0 = scmp.ne.s32.totalorder %s1376_s16, %s1372_s15  ;;  %p42_p1 = scmp.eq.s32.totalorder %s1440_s19, 0 }
   0x8   : > { %p128_p2 = scmp.eq.s32.totalorder %s1440_s19, 1  ;;  %p134_p3 = scmp.eq.s32.totalorder %s857_s20, 1 }
   0x9   : > { %p1449_p4 = por %p42_p1, %p41_p0  ;;  %p858_p5 = scmp.ge.s32.totalorder %s1384_s18, 1 }
   0xa   : > { %p1454_p6 = por %p134_p3, %p41_p0  ;;  %p141_p7 = scmp.lt.s32.totalorder %s1384_s18, 3 }
   0xb   : > { %s152_s25 = sshll.u32 %s1628_s1, 4  ;;  %s1386_s27 = smov [#allocation5]   ;;  %s153_s25 = int_to_ptr.hbm [resolvable:$true] %s152_s25 }
   0xc   : > { %p1462_p8 = pnand %p858_p5, %p141_p7  ;;  %s154_s28 = sshll.u32 %s1386_s27, 4  ;;  %s155_s28 = int_to_ptr.vmem [resolvable:$true] %s154_s28 }
   0xd   : > { %s166_s5 = sshll.u32 %s1629_s2, 4  ;;  %s1387_s6 = smov 64   ;;  %s167_s5 = int_to_ptr.hbm [resolvable:$true] %s166_s5 }
   0xe   : > { %p1162_p9 = pneg %p1462_p8  ;;  %s1388_s7 = smov 4  }
   0xf   : > { %s1389_s8 = smov [#allocation7]   ;;  %s1475_s10 = sadd.s32 1, %s1384_s18  }
  0x10   : > { %p1163_p10 = pnand %p1162_p9, %p42_p1  ;;  %s168_s9 = sshll.u32 %s1389_s8, 4  ;;  %s169_s9 = int_to_ptr.vmem [resolvable:$true] %s168_s9 }
  0x11   : > { %s28_s11 = sadd.s32 1, %s1380_s17  ;;  %s25_s12 = ssub.s32 %s1384_s18, %s1475_s10 }
  0x12   : > { %1165 = dma.hbm_to_vmem [thread:$0]  (!%p1163_p10), %s153_s25, 2048, %s155_s28, [#allocation6], %s1387_s6, %s1387_s6, %s1388_s7  }
  0x13   : > { %1168 = dma.hbm_to_vmem [thread:$0]  (!%p1163_p10), %s167_s5, 1024, %s169_s9, [#allocation6], %s1387_s6, %s1387_s6, %s1388_s7  }
  0x14   : > { %p35_p12 = scmp.ne.s32.totalorder %s1380_s17, %s1376_s16  ;;  %p26_p13 = scmp.eq.s32.totalorder %s25_s12, 0 }
  0x15   : > { %p36_p0 = scmp.eq.s32.totalorder %s1384_s18, 0  ;;  %p1179_p5 = scmp.lt.s32.totalorder %s1384_s18, 2 }
  0x16   : > { %p1485_p3 = por %p128_p2, %p35_p12  ;;  %s185_s20 = sand.u32 1, %s1380_s17  }
  0x17   : > { %s1491_s14 = scalar_select %p26_p13, %s1380_s17, %s28_s11  }
  0x18   : > { %p37_p7 = por %p36_p0, %p35_p12  ;;  %s862_s23 = sshll.u32 %s185_s20, 7 }
  0x19   : > { %s1037_s24 = sshll.u32 %s1384_s18, 7  ;;  %s189_s29 = scalar_lea.vmem [#allocation2], %s862_s23 }
  0x1a   : > { %s195_s28 = scalar_lea.hbm %s1627_s0, %s1037_s24  ;;  %s198_s30 = sshll.u32 %s189_s29, 4  ;;  %s199_s30 = int_to_ptr.vmem [resolvable:$true] %s198_s30 }
  0x1b   : > { %s196_s5 = sshll.u32 %s195_s28, 4  ;;  %p1498_p2 = pnand %p1179_p5, %p37_p7  ;;  %s197_s5 = int_to_ptr.hbm [resolvable:$true] %s196_s5 }
  0x1c   : > { %s186_s7 = scalar_lea.sflag [#allocation3], %s185_s20  ;;  %s1284_s8 = sshra.s32 %s197_s5, 4  ;;  %s1285_s8 = int_to_ptr.hbm [resolvable:$true] %s1284_s8 }
  0x1d   : > { %s1286_s9 = scalar_lea.hbm %s1285_s8, 128  ;;  %p1288_p10 = pneg %p1498_p2 }
  0x1e   : > { %p1287_p9 = scmp.ne.s32.totalorder %s1285_s8, %s1286_s9  ;;  %s1291_s23 = scalar_lea.hbm %s1627_s0, 256 }
  0x1f   : > { %p1292_p0 = scmp.lt.s32.totalorder %s1285_s8, %s1627_s0  ;;  %p1293_p5 = scmp.lt.s32.totalorder %s1291_s23, %s1286_s9 }
  0x20   : > { %p1289_p12 = pnand %p1288_p10, %p1287_p9 }
  0x21   : > { %p1294_p7 = por %p1293_p5, %p1292_p0 }
  0x22   : > { %p1290_p13 = pneg %p1289_p12 }
  0x24   : > { %p1295_p11 = pnand %p1294_p7, %p1290_p13 }
  0x26   : > { %1298 = shalt.err (!%p1295_p11)
}
  0x27   : > { %s1390_s20 = smov 128   ;;  %s1391_s27 = smov 8  }
  0x28   : > { %1172 = dma.hbm_to_vmem [thread:$0]  (!%p1498_p2), %s197_s5, 2048, %s199_s30, %s186_s7, %s1390_s20, %s1390_s20, %s1391_s27  }
  0x29   : > { %210 = sbr.rel (%p1462_p8) target bundleno = 449 (0x1c1), region = 36  ;;  %s1515_s28 = sand.u32 (!%p1462_p8), 1, %s1376_s16  }
  0x2a   : > { %s867_s29 = sshll.u32 (!%p1462_p8), %s1515_s28, 7  ;;  %s213_s8 = scalar_lea.sflag (!%p1462_p8), [#allocation3], %s1515_s28 }
  0x2b   : > { %s1519_s9 = scalar_lea.vmem (!%p1462_p8), [#allocation2], %s867_s29 }
  0x2e   : > { %1359 = dma.done.wait (%p1449_p4), %s213_s8, 2048  }
  0x2f   : > { %1361 = vsyncadd (%p1449_p4), %s213_s8, 4294965248 }
  0x30   : > { %1363 = dma.done.wait (%p42_p1), [#allocation6], 3072  }
  0x31   : > { %1365 = vsyncadd (%p42_p1), [#allocation6], 4294964224  ;;  %v1061_v0 = vld [vmem:[#allocation5 + $0x38] sm:$0xff]  ;;  %v1060_v2 = vld [vmem:[#allocation5 + $0x30] sm:$0xff]  ;;  %s870_s30 = sshll.u32 %s1515_s28, 6  ;;  %s1078_s6 = sshll.u32 %s1440_s19, 6 }
  0x32   : > { %v1069_v1 = vld [vmem:[#allocation5 + $0x78] sm:$0xff]  ;;  %482 = vmatpush.bf16.msra.mxu0 %v1061_v0  ;;  %1126 = vmatpush.bf16.msra.mxu3 %v1061_v0  ;;  %v1068_v3 = vld [vmem:[#allocation5 + $0x70] sm:$0xff]  ;;  %v1059_v4 = vld [vmem:[#allocation5 + $0x28] sm:$0xff]  ;;  %s1583_s5 = scalar_lea.vmem [#allocation8], %s870_s30  ;;  %s761_s12 = scalar_lea.hbm %s1631_s4, %s1078_s6 }
  0x33   : > { %531 = vmatpush.bf16.msra.mxu1 %v1069_v1  ;;  %v1067_v5 = vld [vmem:[#allocation5 + $0x68] sm:$0xff]  ;;  %v1058_v6 = vld [vmem:[#allocation5 + $0x20] sm:$0xff]  ;;  %v1057_v8 = vld [vmem:[#allocation5 + $0x18] sm:$0xff]  ;;  %s762_s23 = sshll.u32 %s1583_s5, 4  ;;  %s764_s24 = sshll.u32 %s761_s12, 4  ;;  %s763_s23 = int_to_ptr.vmem [resolvable:$true] %s762_s23  ;;  %s765_s24 = int_to_ptr.hbm [resolvable:$true] %s764_s24 }
  0x34   : > { %v1066_v7 = vld [vmem:[#allocation5 + $0x60] sm:$0xff]  ;;  %v1065_v9 = vld [vmem:[#allocation5 + $0x58] sm:$0xff]  ;;  %v1056_v10 = vld [vmem:[#allocation5 + $0x10] sm:$0xff]  ;;  %s750_s25 = scalar_lea.sflag [#allocation4], %s1515_s28  ;;  %s1328_s20 = sshra.s32 %s765_s24, 4  ;;  %s1329_s20 = int_to_ptr.hbm [resolvable:$true] %s1328_s20 }
  0x35   : > { %v1064_v11 = vld [vmem:[#allocation5 + $0x50] sm:$0xff]  ;;  %v1055_v12 = vld [vmem:[#allocation5 + $0x8] sm:$0xff]  ;;  %v1054_v14 = vld [vmem:[#allocation5] sm:$0xff]  ;;  %s1330_s27 = scalar_lea.hbm %s1329_s20, 64  ;;  %s1334_s8 = scalar_lea.hbm %s1631_s4, 128 }
  0x36   : > { %483 = vmatpush.bf16.msra.mxu0 %v1060_v2  ;;  %1127 = vmatpush.bf16.msra.mxu3 %v1060_v2  ;;  %v1063_v13 = vld [vmem:[#allocation5 + $0x48] sm:$0xff]  ;;  %v873_v15 = vld [vmem:[%s1519_s9] sm:$0xf]  ;;  %v1038_v20 = vld [vmem:[%s1519_s9 + $0x4] sm:$0xf]  ;;  %p1331_p1 = scmp.ne.s32.totalorder %s1329_s20, %s1330_s27  ;;  %p1335_p11 = scmp.lt.s32.totalorder %s1329_s20, %s1631_s4 }
  0x37   : > { %532 = vmatpush.bf16.msra.mxu1 %v1068_v3  ;;  %v1039_v16 = vld [vmem:[%s1519_s9 + $0x4] sm:$0xf0]  ;;  %v921_v17 = vld [vmem:[%s1519_s9 + $0x60] sm:$0xf]  ;;  %v875_v21 = vld [vmem:[%s1519_s9 + $0x8] sm:$0xf0]  ;;  %p1336_p2 = scmp.lt.s32.totalorder %s1334_s8, %s1330_s27 }
  0x38   : > { %v1051_v18 = vld [vmem:[%s1519_s9 + $0x64] sm:$0xf0]  ;;  %v1062_v19 = vld [vmem:[#allocation5 + $0x40] sm:$0xff]  ;;  %v874_v22 = vor.u32 %v1039_v16, %v873_v15  ;;  %v878_v24 = vor.u32 %v1038_v20, %v875_v21  ;;  %v881_v25 = vld [vmem:[%s1519_s9 + $0x10] sm:$0xf]  ;;  %p1332_p4 = pnand %p1331_p1, %p1485_p3 }
  0x39   : > { %v922_v23 = vor.u32 %v1051_v18, %v921_v17  ;;  %v1041_v26 = vld [vmem:[%s1519_s9 + $0x14] sm:$0xf0]  ;;  %v929_v27 = vld [vmem:[%s1519_s9 + $0x70] sm:$0xf]  ;;  %v1040_v29 = vld [vmem:[%s1519_s9 + $0x14] sm:$0xf]  ;;  %p1337_p9 = por %p1336_p2, %p1335_p11 }
  0x3a   : > { %484 = vmatpush.bf16.msra.mxu0 %v1059_v4  ;;  %1128 = vmatpush.bf16.msra.mxu3 %v1059_v4  ;;  %v1053_v28 = vld [vmem:[%s1519_s9 + $0x74] sm:$0xf0]  ;;  %v883_v30 = vld [vmem:[%s1519_s9 + $0x18] sm:$0xf0]  ;;  %v882_v31 = vor.u32 %v1041_v26, %v881_v25  ;;  %v889_v34 = vld [vmem:[%s1519_s9 + $0x20] sm:$0xf]  ;;  %p1333_p8 = pneg %p1332_p4 }
  0x3b   : > { %533 = vmatpush.bf16.msra.mxu1 %v1067_v5  ;;  %v930_v32 = vor.u32 %v1053_v28, %v929_v27  ;;  %v886_v33 = vor.u32 %v1040_v29, %v883_v30  ;;  %v1043_v35 = vld [vmem:[%s1519_s9 + $0x24] sm:$0xf0]  ;;  %v1050_v36 = vld [vmem:[%s1519_s9 + $0x64] sm:$0xf]  ;;  %v923_v37 = vld [vmem:[%s1519_s9 + $0x68] sm:$0xf0] }
  0x3c   : > { %v1042_v38 = vld [vmem:[%s1519_s9 + $0x24] sm:$0xf]  ;;  %v891_v39 = vld [vmem:[%s1519_s9 + $0x28] sm:$0xf0]  ;;  %v890_v40 = vor.u32 %v1043_v35, %v889_v34  ;;  %v926_v41 = vor.u32 %v1050_v36, %v923_v37  ;;  %v897_v43 = vld [vmem:[%s1519_s9 + $0x30] sm:$0xf]  ;;  %p1338_p10 = pnand %p1337_p9, %p1333_p8 }
  0x3d   : > { %v894_v42 = vor.u32 %v1042_v38, %v891_v39  ;;  %v1045_v44 = vld [vmem:[%s1519_s9 + $0x34] sm:$0xf0]  ;;  %v1052_v45 = vld [vmem:[%s1519_s9 + $0x74] sm:$0xf]  ;;  %v931_v46 = vld [vmem:[%s1519_s9 + $0x78] sm:$0xf0] }
  0x3e   : > { %485 = vmatpush.bf16.msra.mxu0 %v1058_v6  ;;  %1129 = vmatpush.bf16.msra.mxu3 %v1058_v6  ;;  %v1044_v47 = vld [vmem:[%s1519_s9 + $0x34] sm:$0xf]  ;;  %v899_v48 = vld [vmem:[%s1519_s9 + $0x38] sm:$0xf0]  ;;  %v898_v49 = vor.u32 %v1045_v44, %v897_v43  ;;  %v934_v50 = vor.u32 %v1052_v45, %v931_v46  ;;  %v1075_v54 = vld [vmem:[#allocation7 + $0x28] sm:$0xff] }
  0x3f   : > { %534 = vmatpush.bf16.msra.mxu1 %v1066_v7  ;;  %v902_v51 = vor.u32 %v1044_v47, %v899_v48  ;;  %v1077_v52 = vld [vmem:[#allocation7 + $0x38] sm:$0xff]  ;;  %v1076_v53 = vld [vmem:[#allocation7 + $0x30] sm:$0xff]  ;;  %v905_v55 = vld [vmem:[%s1519_s9 + $0x40] sm:$0xf] }
  0x40   : > { %668 = vmatpush.bf16.msra.mxu2 %v1077_v52  ;;  %v1047_v56 = vld [vmem:[%s1519_s9 + $0x44] sm:$0xf0]  ;;  %v1046_v57 = vld [vmem:[%s1519_s9 + $0x44] sm:$0xf]  ;;  %v907_v58 = vld [vmem:[%s1519_s9 + $0x48] sm:$0xf0] }
  0x41   : > { %v1074_v59 = vld [vmem:[#allocation7 + $0x20] sm:$0xff]  ;;  %v906_v60 = vor.u32 %v1047_v56, %v905_v55  ;;  %v910_v61 = vor.u32 %v1046_v57, %v907_v58  ;;  %v913_v62 = vld [vmem:[%s1519_s9 + $0x50] sm:$0xf]  ;;  %v1049_v63 = vld [vmem:[%s1519_s9 + $0x54] sm:$0xf0] }
  0x42   : > { %486 = vmatpush.bf16.msra.mxu0 %v1057_v8  ;;  %1130 = vmatpush.bf16.msra.mxu3 %v1057_v8  ;;  %v1048_v0 = vld [vmem:[%s1519_s9 + $0x54] sm:$0xf]  ;;  %v914_v2 = vor.u32 %v1049_v63, %v913_v62  ;;  %v1073_v4 = vld [vmem:[#allocation7 + $0x18] sm:$0xff]  ;;  %v1071_v6 = vld [vmem:[#allocation7 + $0x8] sm:$0xff] }
  0x43   : > { %535 = vmatpush.bf16.msra.mxu1 %v1065_v9 }
  0x44   : > { %669 = vmatpush.bf16.msra.mxu2 %v1076_v53 }
  0x46   : > { %487 = vmatpush.bf16.msra.mxu0 %v1056_v10  ;;  %1131 = vmatpush.bf16.msra.mxu3 %v1056_v10 }
  0x47   : > { %536 = vmatpush.bf16.msra.mxu1 %v1064_v11 }
  0x48   : > { %670 = vmatpush.bf16.msra.mxu2 %v1075_v54 }
  0x4a   : > { %488 = vmatpush.bf16.msra.mxu0 %v1055_v12  ;;  %1132 = vmatpush.bf16.msra.mxu3 %v1055_v12 }
  0x4b   : > { %537 = vmatpush.bf16.msra.mxu1 %v1063_v13 }
  0x4c   : > { %671 = vmatpush.bf16.msra.mxu2 %v1074_v59 }
  0x4e   : > { %489 = vmatpush.bf16.msra.mxu0 %v1054_v14  ;;  %1133 = vmatpush.bf16.msra.mxu3 %v1054_v14 }
  0x4f   : > { %538 = vmatpush.bf16.msra.mxu1 %v1062_v19 }
  0x50   : > { %672 = vmatpush.bf16.msra.mxu2 %v1073_v4 }
  0x51   : > { %490 = vmatmul.bf16.vlgmr.msra.gmra.mxu0 %v874_v22  ;;  %520 = vmatmul.bf16.vlgmr.msra.gmra.mxu3 %v922_v23 }
  0x52   : > { %1134 = vmatpush.bf16.msrb.mxu3 %v1069_v1  ;;  %539 = vmatmul.bf16.vlgmr.msra.gmra.mxu1 %v878_v24  ;;  %v915_v1 = vld [vmem:[%s1519_s9 + $0x58] sm:$0xf0] }
  0x56   : > { %1135 = vmatpush.bf16.msrb.mxu3 %v1068_v3  ;;  %v918_v3 = vor.u32 %v1048_v0, %v915_v1 }
  0x5a   : > { %1136 = vmatpush.bf16.msrb.mxu3 %v1067_v5  ;;  %v1072_v5 = vld [vmem:[#allocation7 + $0x10] sm:$0xff] }
  0x5b   : > { %673 = vmatpush.bf16.msra.mxu2 %v1072_v5 }
  0x5e   : > { %1137 = vmatpush.bf16.msrb.mxu3 %v1066_v7  ;;  %v1070_v7 = vld [vmem:[#allocation7] sm:$0xff] }
  0x5f   : > { %674 = vmatpush.bf16.msra.mxu2 %v1071_v6 }
  0x61   : > { %495 = vmatmul.bf16.gmra.mxu0 %v882_v31  ;;  %525 = vmatmul.bf16.gmra.mxu3 %v930_v32 }
  0x62   : > { %1138 = vmatpush.bf16.msrb.mxu3 %v1065_v9  ;;  %544 = vmatmul.bf16.gmra.mxu1 %v886_v33  ;;  %v1564_v9 = vld [vmem:[%s1630_s3] ss:$0 sm:$0xff] }
  0x63   : > { %675 = vmatpush.bf16.msra.mxu2 %v1070_v7 }
  0x66   : > { %1139 = vmatpush.bf16.msrb.mxu3 %v1064_v11 }
  0x6a   : > { %1140 = vmatpush.bf16.msrb.mxu3 %v1063_v13 }
  0x6e   : > { %1141 = vmatpush.bf16.msrb.mxu3 %v1062_v19 }
  0x71   : > { %500 = vmatmul.bf16.gmra.mxu0 %v890_v40  ;;  %569 = vmatmul.bf16.vlgmr.msrb.gmra.mxu3 %v926_v41 }
  0x72   : > { %549 = vmatmul.bf16.gmra.mxu1 %v894_v42  ;;  %1142 = vmatpush.bf16.msra.mxu3 %v1077_v52 }
  0x76   : > { %1143 = vmatpush.bf16.msra.mxu3 %v1076_v53 }
  0x7a   : > { %1144 = vmatpush.bf16.msra.mxu3 %v1075_v54 }
  0x7e   : > { %1145 = vmatpush.bf16.msra.mxu3 %v1074_v59 }
  0x81   : > { %505 = vmatmul.bf16.gmra.mxu0 %v898_v49  ;;  %574 = vmatmul.bf16.gmra.mxu3 %v934_v50 }
  0x82   : > { %554 = vmatmul.bf16.gmra.mxu1 %v902_v51  ;;  %1146 = vmatpush.bf16.msra.mxu3 %v1073_v4 }
  0x86   : > { %1147 = vmatpush.bf16.msra.mxu3 %v1072_v5 }
  0x8a   : > { %1148 = vmatpush.bf16.msra.mxu3 %v1071_v6 }
  0x8e   : > { %1149 = vmatpush.bf16.msra.mxu3 %v1070_v7 }
  0x91   : > { %510 = vmatmul.bf16.gmra.mxu0 %v906_v60 }
  0x92   : > { %559 = vmatmul.bf16.gmra.mxu1 %v910_v61 }
  0xa1   : > { %515 = vmatmul.bf16.gmra.mxu0 %v914_v2 }
  0xa2   : > { %564 = vmatmul.bf16.gmra.mxu1 %v918_v3 }
  0xce   : > { %v491_v8 = vpop.f32.mrf.mxu0 }
  0xcf   : > { %v540_v10 = vpop.f32.mrf.mxu1  ;;  %v492_v11 = vadd.f32 %v1564_v9, %v491_v8 }
  0xd1   : > { %v541_v14 = vadd.f32 %v540_v10, %v492_v11 }
  0xd3   : > { %v580_v18 = vmax.f32 %v541_v14, 0.0 }
  0xd4   : > { %v521_v12 = vpop.f32.mrf.mxu3 }
  0xd5   : > { %v522_v43 = vadd.f32 %v1564_v9, %v521_v12 }
  0xd6   : > { %v493_v13 = vpop.f32.mrf.mxu0 }
  0xd7   : > { %v494_v15 = vadd.f32 %v1564_v9, %v493_v13  ;;  %v542_v16 = vpop.f32.mrf.mxu1 }
  0xd9   : > { %v543_v17 = vadd.f32 %v542_v16, %v494_v15 }
  0xdb   : > { %v581_v19 = vmax.f32 %v543_v17, 0.0 }
  0xdc   : > { %v523_v20 = vpop.f32.mrf.mxu3 }
  0xdd   : > { %v596_v21 = vpack.c.bf16 %v581_v19, %v580_v18  ;;  %v524_v45 = vadd.f32 %v1564_v9, %v523_v20 }
  0xde   : > { %v496_v22 = vpop.f32.mrf.mxu0 }
  0xdf   : > { %v545_v23 = vpop.f32.mrf.mxu1  ;;  %676 = vmatmul.bf16.vlgmr.msra.gmra.mxu2 %v596_v21  ;;  %v497_v24 = vadd.f32 %v1564_v9, %v496_v22 }
  0xe1   : > { %v546_v27 = vadd.f32 %v545_v23, %v497_v24 }
  0xe3   : > { %v582_v31 = vmax.f32 %v546_v27, 0.0 }
  0xe4   : > { %v526_v25 = vpop.f32.mrf.mxu3 }
  0xe5   : > { %v527_v63 = vadd.f32 %v1564_v9, %v526_v25 }
  0xe6   : > { %v498_v26 = vpop.f32.mrf.mxu0 }
  0xe7   : > { %v499_v28 = vadd.f32 %v1564_v9, %v498_v26  ;;  %v547_v29 = vpop.f32.mrf.mxu1 }
  0xe9   : > { %v548_v30 = vadd.f32 %v547_v29, %v499_v28 }
  0xeb   : > { %v583_v32 = vmax.f32 %v548_v30, 0.0 }
  0xec   : > { %v528_v33 = vpop.f32.mrf.mxu3 }
  0xed   : > { %v597_v34 = vpack.c.bf16 %v583_v32, %v582_v31  ;;  %v529_v1 = vadd.f32 %v1564_v9, %v528_v33 }
  0xee   : > { %v501_v35 = vpop.f32.mrf.mxu0 }
  0xef   : > { %v550_v36 = vpop.f32.mrf.mxu1  ;;  %681 = vmatmul.bf16.gmra.mxu2 %v597_v34  ;;  %v502_v37 = vadd.f32 %v1564_v9, %v501_v35 }
  0xf1   : > { %v551_v40 = vadd.f32 %v550_v36, %v502_v37 }
  0xf3   : > { %v584_v46 = vmax.f32 %v551_v40, 0.0 }
  0xf4   : > { %v570_v38 = vpop.f32.mrf.mxu3 }
  0xf5   : > { %v571_v47 = vadd.f32 %v570_v38, %v522_v43 }
  0xf6   : > { %v503_v39 = vpop.f32.mrf.mxu0 }
  0xf7   : > { %v504_v41 = vadd.f32 %v1564_v9, %v503_v39  ;;  %v552_v42 = vpop.f32.mrf.mxu1  ;;  %v592_v53 = vmax.f32 %v571_v47, 0.0 }
  0xf9   : > { %v553_v44 = vadd.f32 %v552_v42, %v504_v41 }
  0xfb   : > { %v585_v48 = vmax.f32 %v553_v44, 0.0 }
  0xfc   : > { %v572_v49 = vpop.f32.mrf.mxu3 }
  0xfd   : > { %v573_v50 = vadd.f32 %v572_v49, %v524_v45  ;;  %v598_v51 = vpack.c.bf16 %v585_v48, %v584_v46 }
  0xfe   : > { %v506_v52 = vpop.f32.mrf.mxu0 }
  0xff   : > { %v593_v54 = vmax.f32 %v573_v50, 0.0  ;;  %v555_v55 = vpop.f32.mrf.mxu1  ;;  %686 = vmatmul.bf16.gmra.mxu2 %v598_v51  ;;  %v507_v57 = vadd.f32 %v1564_v9, %v506_v52 }
 0x101   : > { %v602_v56 = vpack.c.bf16 %v593_v54, %v592_v53  ;;  %v556_v60 = vadd.f32 %v555_v55, %v507_v57 }
 0x103   : > { %706 = vmatmul.bf16.vlgmr.msra.gmra.mxu3 %v602_v56  ;;  %v586_v2 = vmax.f32 %v556_v60, 0.0 }
 0x104   : > { %v575_v58 = vpop.f32.mrf.mxu3 }
 0x105   : > { %v576_v3 = vadd.f32 %v575_v58, %v527_v63 }
 0x106   : > { %v508_v59 = vpop.f32.mrf.mxu0 }
 0x107   : > { %v509_v61 = vadd.f32 %v1564_v9, %v508_v59  ;;  %v557_v62 = vpop.f32.mrf.mxu1  ;;  %v594_v10 = vmax.f32 %v576_v3, 0.0 }
 0x109   : > { %v558_v0 = vadd.f32 %v557_v62, %v509_v61 }
 0x10b   : > { %v587_v4 = vmax.f32 %v558_v0, 0.0 }
 0x10c   : > { %v577_v5 = vpop.f32.mrf.mxu3 }
 0x10d   : > { %v578_v6 = vadd.f32 %v577_v5, %v529_v1  ;;  %v599_v7 = vpack.c.bf16 %v587_v4, %v586_v2 }
 0x10e   : > { %v511_v8 = vpop.f32.mrf.mxu0 }
 0x10f   : > { %v595_v11 = vmax.f32 %v578_v6, 0.0  ;;  %v560_v12 = vpop.f32.mrf.mxu1  ;;  %691 = vmatmul.bf16.gmra.mxu2 %v599_v7  ;;  %v512_v14 = vadd.f32 %v1564_v9, %v511_v8 }
 0x111   : > { %v603_v13 = vpack.c.bf16 %v595_v11, %v594_v10  ;;  %v561_v16 = vadd.f32 %v560_v12, %v512_v14 }
 0x113   : > { %711 = vmatmul.bf16.gmra.mxu3 %v603_v13  ;;  %v588_v20 = vmax.f32 %v561_v16, 0.0 }
 0x116   : > { %v513_v15 = vpop.f32.mrf.mxu0 }
 0x117   : > { %v514_v17 = vadd.f32 %v1564_v9, %v513_v15  ;;  %v562_v18 = vpop.f32.mrf.mxu1 }
 0x119   : > { %v563_v19 = vadd.f32 %v562_v18, %v514_v17 }
 0x11b   : > { %v589_v21 = vmax.f32 %v563_v19, 0.0 }
 0x11d   : > { %v600_v22 = vpack.c.bf16 %v589_v21, %v588_v20 }
 0x11e   : > { %v516_v23 = vpop.f32.mrf.mxu0 }
 0x11f   : > { %v565_v24 = vpop.f32.mrf.mxu1  ;;  %696 = vmatmul.bf16.gmra.mxu2 %v600_v22  ;;  %v517_v25 = vadd.f32 %v1564_v9, %v516_v23 }
 0x121   : > { %v566_v27 = vadd.f32 %v565_v24, %v517_v25 }
 0x123   : > { %v590_v31 = vmax.f32 %v566_v27, 0.0 }
 0x126   : > { %v518_v26 = vpop.f32.mrf.mxu0 }
 0x127   : > { %v519_v28 = vadd.f32 %v1564_v9, %v518_v26  ;;  %v567_v29 = vpop.f32.mrf.mxu1 }
 0x129   : > { %v568_v30 = vadd.f32 %v567_v29, %v519_v28 }
 0x12b   : > { %v591_v32 = vmax.f32 %v568_v30, 0.0 }
 0x12d   : > { %v601_v33 = vpack.c.bf16 %v591_v32, %v590_v31 }
 0x12f   : > { %701 = vmatmul.bf16.gmra.mxu2 %v601_v33 }
 0x162   : > { %v677_v34 = vpop.f32.mrf.mxu2 }
 0x16a   : > { %v679_v35 = vpop.f32.mrf.mxu2 }
 0x16b   : > { %v1082_v36 = vpack.c.bf16 %v679_v35, %v677_v34 }
 0x16d   : > { %1083 = vst [vmem:[%s1583_s5] sm:$0xff] %v1082_v36  }
 0x172   : > { %v682_v37 = vpop.f32.mrf.mxu2 }
 0x17a   : > { %v684_v9 = vpop.f32.mrf.mxu2 }
 0x17b   : > { %v1087_v38 = vpack.c.bf16 %v684_v9, %v682_v37 }
 0x17d   : > { %1119 = vst [vmem:[%s1583_s5 + $0x8] sm:$0xff] %v1087_v38  }
 0x182   : > { %v687_v39 = vpop.f32.mrf.mxu2 }
 0x186   : > { %v707_v40 = vpop.f32.mrf.mxu3 }
 0x18a   : > { %v689_v41 = vpop.f32.mrf.mxu2 }
 0x18b   : > { %v1092_v42 = vpack.c.bf16 %v689_v41, %v687_v39 }
 0x18d   : > { %1120 = vst [vmem:[%s1583_s5 + $0x10] sm:$0xff] %v1092_v42  }
 0x18e   : > { %v709_v43 = vpop.f32.mrf.mxu3 }
 0x18f   : > { %v1112_v44 = vpack.c.bf16 %v709_v43, %v707_v40 }
 0x191   : > { %1124 = vst [vmem:[%s1583_s5 + $0x30] sm:$0xff] %v1112_v44  }
 0x192   : > { %v692_v45 = vpop.f32.mrf.mxu2 }
 0x196   : > { %v712_v46 = vpop.f32.mrf.mxu3 }
 0x19a   : > { %v694_v47 = vpop.f32.mrf.mxu2 }
 0x19b   : > { %v1097_v48 = vpack.c.bf16 %v694_v47, %v692_v45 }
 0x19d   : > { %1121 = vst [vmem:[%s1583_s5 + $0x18] sm:$0xff] %v1097_v48  }
 0x19e   : > { %v714_v49 = vpop.f32.mrf.mxu3 }
 0x19f   : > { %v1117_v50 = vpack.c.bf16 %v714_v49, %v712_v46 }
 0x1a1   : > { %1125 = vst [vmem:[%s1583_s5 + $0x38] sm:$0xff] %v1117_v50  }
 0x1a2   : > { %v697_v51 = vpop.f32.mrf.mxu2 }
 0x1aa   : > { %v699_v52 = vpop.f32.mrf.mxu2 }
 0x1ab   : > { %v1102_v53 = vpack.c.bf16 %v699_v52, %v697_v51 }
 0x1ad   : > { %1122 = vst [vmem:[%s1583_s5 + $0x20] sm:$0xff] %v1102_v53  }
 0x1b2   : > { %v702_v54 = vpop.f32.mrf.mxu2 }
 0x1ba   : > { %v704_v55 = vpop.f32.mrf.mxu2 }
 0x1bb   : > { %v1107_v56 = vpack.c.bf16 %v704_v55, %v702_v54 }
 0x1bd   : > { %1123 = vst [vmem:[%s1583_s5 + $0x28] sm:$0xff] %v1107_v56  }
 0x1be   : > { %1341 = shalt.err (!%p1338_p10)
}
 0x1bf   : > { %s1392_s28 = smov 64   ;;  %s1393_s26 = smov 4  }
 0x1c0   : > { %1160 = dma.vmem_to_hbm [thread:$0]  (%p1485_p3), %s763_s23, 1024, %s765_s24, %s750_s25, %s1392_s28, %s1392_s28, %s1393_s26  }
 0x1c1 PF: > { %s779_s30 = sand.u32 1, %s1372_s15   ;;  %p1637_p12 = scmp.ge.s32.totalorder %s1384_s18, 2 }
 0x1c2   : > { %s780_s5 = scalar_lea.sflag [#allocation4], %s779_s30 }
 0x1c3   : > { %p1174_p13 = pnand %p1637_p12, %p1454_p6 }
 0x1c5   : > { %p1175_p0 = pneg %p1174_p13 }
 0x1c7   : > { %1367 = dma.done.wait (%p1175_p0), %s780_s5, 1024  }
 0x1c8   : > { %1369 = vsyncadd (%p1175_p0), %s780_s5, 4294966272  ;;  %p18_p5 = scmp.ge.s32.totalorder %s1475_s10, 4   ;;  %s1638_s15 = smov %s1376_s16 }
 0x1c9   : > { %s1639_s16 = smov %s1380_s17  ;;  %s1640_s17 = smov %s1491_s14 }
 0x1ca   : > { %s1641_s18 = smov %s1475_s10  ;;  %20 = sbr.rel (!%p18_p5) target bundleno = 6 (0x6), region = 89 }
 0x1cf   :  { %786 = vsyncpa [#allocation3], 1 }
 0x1d0   :  { %788 = vsyncpa [#allocation3 + $0x1], 1 }
 0x1d1   :  { %789 = vsyncpa [#allocation6], 1 }
 0x1d2   :  { %790 = vsyncpa [#allocation4], 1 }
 0x1d3   :  { %792 = vsyncpa [#allocation4 + $0x1], 1 }

</bundles_post_ra>
